<compile_context>
chip_gen: v5e
topology: v5e:2x2
jax: 0.10.0
libtpu: 0.0.40
codegen_flags: <defaults>
</compile_context>

<pallas_src>
import functools

import jax
import jax.numpy as jnp
from jax.experimental import pallas as pl
from jax.experimental.pallas import tpu as pltpu

HIDDEN = 64


def _round_up(x, m):
    return ((x + m - 1) // m) * m


def _make_critic_kernel(use_bf16):
    def critic_kernel(x_ref, w1_ref, b1_ref, w2_ref, b2_ref, w3_ref, b3_ref, o_ref):
        # x_ref: (TB, D) tile of the batch; weights/biases are full arrays.
        x = x_ref[...]
        w1 = w1_ref[...]
        w2 = w2_ref[...]
        if use_bf16:
            x = x.astype(jnp.bfloat16)
            w1 = w1.astype(jnp.bfloat16)
            w2 = w2.astype(jnp.bfloat16)

        # Layer 1: (TB, D) @ (D, 64) on the MXU, f32 accumulate; bias+ReLU on VPU.
        h1 = jnp.dot(x, w1, preferred_element_type=jnp.float32) + b1_ref[...]
        h1 = jnp.maximum(h1, 0.0)

        # Layer 2: (TB, 64) @ (64, 64) on the MXU.
        h1_in = h1.astype(jnp.bfloat16) if use_bf16 else h1
        h2 = jnp.dot(h1_in, w2, preferred_element_type=jnp.float32) + b2_ref[...]
        h2 = jnp.maximum(h2, 0.0)

        # Layer 3 (N=1): VPU multiply + 64-lane XLU reduce instead of a 1-wide
        # MXU matmul; fold the scalar bias into the epilogue.
        # w3_ref is (1, 64), b3_ref is (1, 1).
        out = jnp.sum(h2 * w3_ref[...], axis=-1, keepdims=True) + b3_ref[...]

        o_ref[...] = out.astype(o_ref.dtype)

    return critic_kernel


@functools.partial(jax.jit, static_argnames=("tb", "use_bf16"))
def critic_forward(x, params, *, tb=1024, use_bf16=False):
    """x: (B, state_dim) float32. params: dict with w1,b1,w2,b2,w3,b3."""
    B, D = x.shape
    w1, b1, w2, b2 = params["w1"], params["b1"], params["w2"], params["b2"]
    # Present w3 as a lane-dense (1, 64) row for the VPU/XLU epilogue.
    w3_row = params["w3"].reshape(1, HIDDEN)
    b3 = params["b3"].reshape(1, 1)

    # Batch tile: multiple of 8 (f32 sublane), capped so the double-buffered
    # x tile stays far under v7x's 64 MiB VMEM (TB*D*4 B per buffer).
    TB = min(tb, _round_up(B, 8))
    TB = _round_up(TB, 8)
    B_pad = _round_up(B, TB)
    if B_pad != B:
        x = jnp.pad(x, ((0, B_pad - B), (0, 0)))
    grid = (B_pad // TB,)

    def const_spec(arr):
        return pl.BlockSpec(arr.shape, lambda i: (0,) * arr.ndim)

    weight_bytes = sum(a.size * a.dtype.itemsize for a in (w1, b1, w2, b2, w3_row, b3))
    cost = pl.CostEstimate(
        flops=2 * B_pad * (D * HIDDEN + HIDDEN * HIDDEN + HIDDEN),
        transcendentals=0,
        bytes_accessed=B_pad * D * 4 + B_pad * 4 + weight_bytes,
    )

    out = pl.pallas_call(
        _make_critic_kernel(use_bf16),
        out_shape=jax.ShapeDtypeStruct((B_pad, 1), jnp.float32),
        grid_spec=pltpu.PrefetchScalarGridSpec(
            num_scalar_prefetch=0,
            grid=grid,
            in_specs=[
                pl.BlockSpec((TB, D), lambda i: (i, 0)),  # x: batch-tiled
                const_spec(w1),
                const_spec(b1),
                const_spec(w2),
                const_spec(b2),
                const_spec(w3_row),
                const_spec(b3),
            ],
            out_specs=pl.BlockSpec((TB, 1), lambda i: (i, 0)),
        ),
        compiler_params=pltpu.CompilerParams(
            dimension_semantics=("parallel",),
        ),
        cost_estimate=cost,
    )(x, w1, b1, w2, b2, w3_row, b3)

    return out[:B] if B_pad != B else out


def init_params(key, state_dim):
    """Mimics PyTorch's default Linear init (uniform +/- 1/sqrt(fan_in))."""
    ks = jax.random.split(key, 6)

    def lin(kw, kb, fan_in, fan_out):
        bound = 1.0 / jnp.sqrt(fan_in)
        w = jax.random.uniform(kw, (fan_in, fan_out), jnp.float32, -bound, bound)
        b = jax.random.uniform(kb, (1, fan_out), jnp.float32, -bound, bound)
        return w, b

    w1, b1 = lin(ks[0], ks[1], state_dim, HIDDEN)
    w2, b2 = lin(ks[2], ks[3], HIDDEN, HIDDEN)
    w3, b3 = lin(ks[4], ks[5], HIDDEN, 1)
    return {"w1": w1, "b1": b1, "w2": w2, "b2": b2, "w3": w3, "b3": b3}


def _reference(x, params):
    h1 = jnp.maximum(x @ params["w1"] + params["b1"], 0.0)
    h2 = jnp.maximum(h1 @ params["w2"] + params["b2"], 0.0)
    return h2 @ params["w3"] + params["b3"]


if __name__ == "__main__":
    key = jax.random.PRNGKey(0)
    k_params, k_x1, k_x2 = jax.random.split(key, 3)

    state_dim = 16
    params = init_params(k_params, state_dim)

    # Small case: single tile (grid=(1,)).
    x_small = jax.random.normal(k_x1, (8, state_dim), jnp.float32)
    out_small = jax.block_until_ready(critic_forward(x_small, params))
    ref_small = _reference(x_small, params)
    assert out_small.shape == (8, 1)
    assert jnp.allclose(out_small, ref_small, atol=1e-5, rtol=1e-5)

    # Larger, non-multiple batch: exercises padding + multi-step grid pipeline.
    x_big = jax.random.normal(k_x2, (300, state_dim), jnp.float32)
    out_big = jax.block_until_ready(critic_forward(x_big, params, tb=128))
    ref_big = _reference(x_big, params)
    assert out_big.shape == (300, 1)
    assert jnp.allclose(out_big, ref_big, atol=1e-5, rtol=1e-5)

    print("KERNEL_OK")
</pallas_src>

<mosaic_0001>
module attributes {stable_mosaic.version = 11 : i64} {
  func.func @critic_kernel(%arg0: i32, %arg1: memref<8x16xf32, #tpu.memory_space<vmem>>, %arg2: memref<16x64xf32, #tpu.memory_space<vmem>>, %arg3: memref<1x64xf32, #tpu.memory_space<vmem>>, %arg4: memref<64x64xf32, #tpu.memory_space<vmem>>, %arg5: memref<1x64xf32, #tpu.memory_space<vmem>>, %arg6: memref<1x64xf32, #tpu.memory_space<vmem>>, %arg7: memref<1x1xf32, #tpu.memory_space<vmem>>, %arg8: memref<8x1xf32, #tpu.memory_space<vmem>>) attributes {dimension_semantics = [#tpu.dimension_semantics<parallel>], iteration_bounds = array<i64: 1>, scalar_prefetch = 0 : i64, scratch_operands = 0 : i64, tpu.core_type = #tpu.core_type<tc>, window_params = [{transform_indices = @transform_0, window_bounds = array<i64: 8, 16>}, {pipeline_mode = #tpu.pipeline_mode<synchronous>, transform_indices = @transform_1, window_bounds = array<i64: 16, 64>}, {pipeline_mode = #tpu.pipeline_mode<synchronous>, transform_indices = @transform_2, window_bounds = array<i64: 1, 64>}, {pipeline_mode = #tpu.pipeline_mode<synchronous>, transform_indices = @transform_3, window_bounds = array<i64: 64, 64>}, {pipeline_mode = #tpu.pipeline_mode<synchronous>, transform_indices = @transform_4, window_bounds = array<i64: 1, 64>}, {pipeline_mode = #tpu.pipeline_mode<synchronous>, transform_indices = @transform_5, window_bounds = array<i64: 1, 64>}, {pipeline_mode = #tpu.pipeline_mode<synchronous>, transform_indices = @transform_6, window_bounds = array<i64: 1, 1>}, {transform_indices = @transform_7, window_bounds = array<i64: 8, 1>}]} {
    %c0 = arith.constant 0 : index
    %c0_0 = arith.constant 0 : index
    %0 = vector.load %arg1[%c0, %c0_0] : memref<8x16xf32, #tpu.memory_space<vmem>>, vector<8x16xf32>
    %c0_1 = arith.constant 0 : index
    %c0_2 = arith.constant 0 : index
    %1 = vector.load %arg2[%c0_1, %c0_2] : memref<16x64xf32, #tpu.memory_space<vmem>>, vector<16x64xf32>
    %c0_3 = arith.constant 0 : index
    %c0_4 = arith.constant 0 : index
    %2 = vector.load %arg4[%c0_3, %c0_4] : memref<64x64xf32, #tpu.memory_space<vmem>>, vector<64x64xf32>
    %cst = arith.constant dense<0.000000e+00> : vector<8x64xf32>
    %3 = tpu.matmul %0, %1, %cst {dimension_numbers = #tpu.dot_dimension_numbers<[1], [0], [0], [1], [0, 0, 1, 1], [], []>} : vector<8x16xf32>, vector<16x64xf32>, vector<8x64xf32> -> vector<8x64xf32>
    %c0_5 = arith.constant 0 : index
    %c0_6 = arith.constant 0 : index
    %4 = vector.load %arg3[%c0_5, %c0_6] : memref<1x64xf32, #tpu.memory_space<vmem>>, vector<1x64xf32>
    %5 = vector.broadcast %4 : vector<1x64xf32> to vector<8x64xf32>
    %6 = arith.addf %3, %5 : vector<8x64xf32>
    %cst_7 = arith.constant 0.000000e+00 : f32
    %7 = vector.broadcast %cst_7 : f32 to vector<8x64xf32>
    %8 = arith.maximumf %6, %7 : vector<8x64xf32>
    %cst_8 = arith.constant dense<0.000000e+00> : vector<8x64xf32>
    %9 = tpu.matmul %8, %2, %cst_8 {dimension_numbers = #tpu.dot_dimension_numbers<[1], [0], [0], [1], [0, 0, 1, 1], [], []>} : vector<8x64xf32>, vector<64x64xf32>, vector<8x64xf32> -> vector<8x64xf32>
    %c0_9 = arith.constant 0 : index
    %c0_10 = arith.constant 0 : index
    %10 = vector.load %arg5[%c0_9, %c0_10] : memref<1x64xf32, #tpu.memory_space<vmem>>, vector<1x64xf32>
    %11 = vector.broadcast %10 : vector<1x64xf32> to vector<8x64xf32>
    %12 = arith.addf %9, %11 : vector<8x64xf32>
    %cst_11 = arith.constant 0.000000e+00 : f32
    %13 = vector.broadcast %cst_11 : f32 to vector<8x64xf32>
    %14 = arith.maximumf %12, %13 : vector<8x64xf32>
    %c0_12 = arith.constant 0 : index
    %c0_13 = arith.constant 0 : index
    %15 = vector.load %arg6[%c0_12, %c0_13] : memref<1x64xf32, #tpu.memory_space<vmem>>, vector<1x64xf32>
    %16 = vector.broadcast %15 : vector<1x64xf32> to vector<8x64xf32>
    %17 = arith.mulf %14, %16 : vector<8x64xf32>
    %cst_14 = arith.constant dense<0.000000e+00> : vector<8xf32>
    %18 = vector.multi_reduction <add>, %17, %cst_14 [1] : vector<8x64xf32> to vector<8xf32>
    %19 = vector.shape_cast %18 : vector<8xf32> to vector<8x1xf32>
    %c0_15 = arith.constant 0 : index
    %c0_16 = arith.constant 0 : index
    %20 = vector.load %arg7[%c0_15, %c0_16] : memref<1x1xf32, #tpu.memory_space<vmem>>, vector<1x1xf32>
    %21 = vector.broadcast %20 : vector<1x1xf32> to vector<8x1xf32>
    %22 = arith.addf %19, %21 : vector<8x1xf32>
    %c0_17 = arith.constant 0 : index
    %c0_18 = arith.constant 0 : index
    %23 = vector.load %arg8[%c0_17, %c0_18] : memref<8x1xf32, #tpu.memory_space<vmem>>, vector<8x1xf32>
    tpu.vector_store %arg8[%c0_17, %c0_18], %22 {strides = array<i32>} : memref<8x1xf32, #tpu.memory_space<vmem>>, vector<8x1xf32>,
    return
  }
  func.func @transform_0(%arg0: i32) -> (i32, i32) {
    %c0_i32 = arith.constant 0 : i32
    %c0_i32_0 = arith.constant 0 : i32
    return %arg0, %c0_i32 : i32, i32
  }
  func.func @transform_1(%arg0: i32) -> (i32, i32) {
    %c0_i32 = arith.constant 0 : i32
    %c0_i32_0 = arith.constant 0 : i32
    %c0_i32_1 = arith.constant 0 : i32
    return %c0_i32, %c0_i32_0 : i32, i32
  }
  func.func @transform_2(%arg0: i32) -> (i32, i32) {
    %c0_i32 = arith.constant 0 : i32
    %c0_i32_0 = arith.constant 0 : i32
    %c0_i32_1 = arith.constant 0 : i32
    return %c0_i32, %c0_i32_0 : i32, i32
  }
  func.func @transform_3(%arg0: i32) -> (i32, i32) {
    %c0_i32 = arith.constant 0 : i32
    %c0_i32_0 = arith.constant 0 : i32
    %c0_i32_1 = arith.constant 0 : i32
    return %c0_i32, %c0_i32_0 : i32, i32
  }
  func.func @transform_4(%arg0: i32) -> (i32, i32) {
    %c0_i32 = arith.constant 0 : i32
    %c0_i32_0 = arith.constant 0 : i32
    %c0_i32_1 = arith.constant 0 : i32
    return %c0_i32, %c0_i32_0 : i32, i32
  }
  func.func @transform_5(%arg0: i32) -> (i32, i32) {
    %c0_i32 = arith.constant 0 : i32
    %c0_i32_0 = arith.constant 0 : i32
    %c0_i32_1 = arith.constant 0 : i32
    return %c0_i32, %c0_i32_0 : i32, i32
  }
  func.func @transform_6(%arg0: i32) -> (i32, i32) {
    %c0_i32 = arith.constant 0 : i32
    %c0_i32_0 = arith.constant 0 : i32
    %c0_i32_1 = arith.constant 0 : i32
    return %c0_i32, %c0_i32_0 : i32, i32
  }
  func.func @transform_7(%arg0: i32) -> (i32, i32) {
    %c0_i32 = arith.constant 0 : i32
    %c0_i32_0 = arith.constant 0 : i32
    return %arg0, %c0_i32 : i32, i32
  }
}

</mosaic_0001>

<bundles_post_ra>
// kernel: critic_forward.1
= control target key start
LH: loop header
LB: loop body
LE: loop exit
PB: predicated region body
PF: predicated region fallthrough
CT: control target
= control target key end

     0   :  { %s319_s0 = inlined_call_operand.hbm [shape: f32[8,16], index: 0, kind: input, shape index: {}]   ;;  %s320_s1 = inlined_call_operand.hbm [shape: f32[16,64], index: 1, kind: input, shape index: {}]   ;;  %s321_s2 = inlined_call_operand.vmem [shape: f32[1,64], index: 2, kind: input, shape index: {}]   ;;  %s322_s3 = inlined_call_operand.hbm [shape: f32[64,64], index: 3, kind: input, shape index: {}]   ;;  %s323_s4 = inlined_call_operand.vmem [shape: f32[1,64], index: 4, kind: input, shape index: {}]   ;;  %s324_s5 = inlined_call_operand.vmem [shape: f32[1,64], index: 5, kind: input, shape index: {}]   ;;  %s325_s6 = inlined_call_operand.<no memory space> [shape: f32[1,1], index: 6, kind: input, shape index: {}]   ;;  %s326_s7 = inlined_call_operand.vmem [shape: f32[8,1], index: 7, kind: output, shape index: {}]  }
   0x1   :  { %v12_v0 = vstv %s325_s6 }
   0x2   :  { %13 = vst [vmem:[#allocation2] sm:$0x1] %v12_v0 }
   0x3   :  { %14 = vsyncpa [#allocation4], 0 }
   0x4   :  { %15 = vsyncpa [#allocation6], 0  ;;  %s31_s28 = sshll.u32 %s320_s1, 4  ;;  %s250_s29 = smov [#allocation5]   ;;  %s32_s28 = int_to_ptr.hbm [resolvable:$true] %s31_s28 }
   0x5   :  { %s33_s30 = sshll.u32 %s250_s29, 4  ;;  %s21_s10 = sshll.u32 %s319_s0, 4  ;;  %s34_s30 = int_to_ptr.vmem [resolvable:$true] %s33_s30  ;;  %s22_s10 = int_to_ptr.hbm [resolvable:$true] %s21_s10 }
   0x6   :  { %s251_s11 = smov 128   ;;  %s252_s12 = smov 8  }
   0x7   :  { %39 = dma.hbm_to_vmem [thread:$0]  %s32_s28, 256, %s34_s30, [#allocation6], %s251_s11, %s251_s11, %s252_s12  }
   0x8   :  { %s253_s6 = smov [#allocation3]   ;;  %s46_s16 = sshll.u32 %s322_s3, 4  ;;  %s47_s16 = int_to_ptr.hbm [resolvable:$true] %s46_s16 }
   0x9   :  { %s23_s13 = sshll.u32 %s253_s6, 4  ;;  %s254_s1 = smov [#allocation7]   ;;  %s24_s13 = int_to_ptr.vmem [resolvable:$true] %s23_s13 }
   0xa   :  { %26 = dma.hbm_to_vmem [thread:$0]  %s22_s10, 128, %s24_s13, [#allocation4]  }
   0xb   :  { %s48_s17 = sshll.u32 %s254_s1, 4  ;;  %s49_s17 = int_to_ptr.vmem [resolvable:$true] %s48_s17 }
   0xc   :  { %54 = dma.hbm_to_vmem [thread:$0]  %s47_s16, 1024, %s49_s17, [#allocation6], %s251_s11, %s251_s11, %s252_s12  }
   0xd   :  { %246 = dma.done.wait [#allocation4], 128  }
   0xe   :  { %247 = vsyncadd [#allocation4], 4294967168 }
   0xf   :  { %248 = dma.done.wait [#allocation6], 1280  }
  0x10   :  { %249 = vsyncadd [#allocation6], 4294966016  ;;  %v75_v1 = vld [vmem:[#allocation5 + $0x8] sm:$0xff]  ;;  %v74_v2 = vld [vmem:[#allocation5] sm:$0xff]  ;;  %vm88_vm0 = vcmask 130048   ;;  %vm117_vm1 = vcmask 523264  }
  0x11   :  { %106 = vmatpush.msra.mxu0 %v75_v1  ;;  %v73_v3 = vld [vmem:[#allocation3] sm:$0xff]  ;;  %v83_v4 = vld [vmem:[#allocation7 + $0x38] sm:$0xff]  ;;  %v82_v5 = vld [vmem:[#allocation7 + $0x30] sm:$0xff]  ;;  %vm155_vm2 = vcmask 7168  }
  0x12   :  { %129 = vmatpush.msra.mxu1 %v83_v4  ;;  %v81_v6 = vld [vmem:[#allocation7 + $0x28] sm:$0xff]  ;;  %v80_v7 = vld [vmem:[#allocation7 + $0x20] sm:$0xff]  ;;  %v79_v8 = vld [vmem:[#allocation7 + $0x18] sm:$0xff] }
  0x13   :  { %107 = vmatpush.msra.mxu0 %v74_v2  ;;  %v78_v9 = vld [vmem:[#allocation7 + $0x10] sm:$0xff]  ;;  %v77_v10 = vld [vmem:[#allocation7 + $0x8] sm:$0xff]  ;;  %v76_v11 = vld [vmem:[#allocation7] sm:$0xff] }
  0x14   :  { %163 = vmatmul.msk.f32.vlgmr.msra.gmra.mxu0 %vm88_vm0, %v73_v3  ;;  %130 = vmatpush.msra.mxu1 %v82_v5  ;;  %v170_v12 = vld [vmem:[%s321_s2] ss:$0 sm:$0xff] }
  0x15   :  { %v171_v16 = vld [vmem:[%s323_s4] ss:$0 sm:$0xff] }
  0x16   :  { %131 = vmatpush.msra.mxu1 %v81_v6  ;;  %v172_v19 = vld [vmem:[%s324_s5] ss:$0 sm:$0xff] }
  0x17   :  { %v173_v23 = vld [vmem:[#allocation2] ss:$0 sm:$0xff] }
  0x18   :  { %132 = vmatpush.msra.mxu1 %v80_v7 }
  0x1a   :  { %133 = vmatpush.msra.mxu1 %v79_v8 }
  0x1c   :  { %134 = vmatpush.msra.mxu1 %v78_v9 }
  0x1e   :  { %135 = vmatpush.msra.mxu1 %v77_v10 }
  0x20   :  { %136 = vmatpush.msra.mxu1 %v76_v11 }
  0x91   :  { %v109_v13 = vpop.f32.mrf.mxu0 }
  0x92   :  { %v110_v14 = vadd.f32 %v170_v12, %v109_v13 }
  0x94   :  { %v112_v15 = vmax.f32 %v110_v14, 0.0 }
  0x96   :  { %164 = vmatmul.msk.f32.vlgmr.msra.gmra.mxu1 %vm117_vm1, %v112_v15 }
 0x113   :  { %v138_v17 = vpop.f32.mrf.mxu1 }
 0x114   :  { %v139_v18 = vadd.f32 %v171_v16, %v138_v17 }
 0x116   :  { %v141_v20 = vmax.f32 %v139_v18, 0.0 }
 0x118   :  { %v146_v21 = vmul.f32 %v172_v19, %v141_v20 }
 0x11a   :  { %v147_v22 = vsel %vm117_vm1, %v146_v21, 0.0 }
 0x11b   :  { %148 = vadd.xlane.f32.xlu0 %v147_v22 }
 0x18e   :  { %v149_v24 = vpop.xlane.xlu0 %148 }
 0x18f   :  { %v154_v25 = vadd.f32 %v173_v23, %v149_v24 }
 0x191   :  { %156 = vst.msk [vmem:[%s326_s7] sm:$0xff] %vm155_vm2, %v154_v25 }
 0x192   :  { %161 = vsyncpa [#allocation4], 1 }
 0x193   :  { %162 = vsyncpa [#allocation6], 1 }

</bundles_post_ra>
